<compile_context>
chip_gen: v7x
topology: tpu7x:2x2x1
jax: 0.10.0
libtpu: 0.0.40
codegen_flags: <defaults>
</compile_context>

<pallas_src>
import jax
import jax.numpy as jnp
from jax.experimental import pallas as pl
from jax.experimental.pallas import tpu as pltpu

EPS = 1e-5


# ----------------------------------------------------------------------------
# Helpers
# ----------------------------------------------------------------------------
def _vmem_limit_bytes():
    """Scoped VMEM budget: ~3/4 of physical VMEM, capped at 96 MiB."""
    try:
        cap = pltpu.get_tpu_info().vmem_capacity_bytes
    except Exception:
        cap = 128 * 1024 * 1024
    return int(min(96 * 1024 * 1024, cap * 3 // 4))


def _pick_tile_rows(n, requested):
    """Largest row-tile <= requested that divides n and is a multiple of 8."""
    t = min(requested, n)
    if t >= 8:
        t -= t % 8
        while t > 8 and n % t:
            t -= 8
    if t < 8 or n % t:
        t = n  # full extent is always legal
    return t


def prepare_mixer_params(mixer_w, mixer_b):
    """One-time prep (outside the hot path): transpose + bf16 cast of W."""
    wt = jnp.asarray(mixer_w.T, dtype=jnp.bfloat16)         # (D, D) so y @ wt == y @ W^T
    wb = jnp.asarray(mixer_b, dtype=jnp.float32).reshape(1, -1)
    return wt, wb


# ----------------------------------------------------------------------------
# Kernels
# ----------------------------------------------------------------------------
def _norm_mix(res_f32, gamma_ref, beta_ref, w_ref, wb_ref, out_h_ref):
    """LayerNorm (f32 statistics) + bf16 MXU Linear mixer."""
    mean = jnp.mean(res_f32, axis=-1, keepdims=True)
    cent = res_f32 - mean
    var = jnp.mean(cent * cent, axis=-1, keepdims=True)
    inv = jax.lax.rsqrt(var + EPS)
    y = cent * inv * gamma_ref[...].astype(jnp.float32) + beta_ref[...].astype(jnp.float32)

    mixed = jnp.dot(y.astype(jnp.bfloat16), w_ref[...],
                    preferred_element_type=jnp.float32)
    out_h_ref[...] = (mixed + wb_ref[...].astype(jnp.float32)).astype(out_h_ref.dtype)


def _block_kernel(h_ref, r_ref, gamma_ref, beta_ref, w_ref, wb_ref,
                  out_h_ref, out_r_ref):
    res = h_ref[...].astype(jnp.float32) + r_ref[...].astype(jnp.float32)
    out_r_ref[...] = res.astype(out_r_ref.dtype)          # residual_in_fp32=True
    _norm_mix(res, gamma_ref, beta_ref, w_ref, wb_ref, out_h_ref)


def _block_kernel_nores(h_ref, gamma_ref, beta_ref, w_ref, wb_ref,
                        out_h_ref, out_r_ref):
    # First block: residual is None -> residual = hidden_states (no extra HBM read)
    res = h_ref[...].astype(jnp.float32)
    out_r_ref[...] = res.astype(out_r_ref.dtype)
    _norm_mix(res, gamma_ref, beta_ref, w_ref, wb_ref, out_h_ref)


# ----------------------------------------------------------------------------
# Forward wrapper
# ----------------------------------------------------------------------------
def block_forward(hidden_states, residual, gamma, beta, mixer_wt_bf16, mixer_b_row,
                  *, tile_rows=256):
    """hidden_states, residual: (B, L, D). Returns (hidden_out, residual_out)."""
    B, L, D = hidden_states.shape
    N = B * L
    tr = _pick_tile_rows(N, tile_rows)

    h2 = hidden_states.reshape(N, D)
    g2 = gamma.reshape(1, D)
    b2 = beta.reshape(1, D)

    row_spec = pl.BlockSpec((tr, D), lambda i: (i, 0))
    param_spec = pl.BlockSpec((1, D), lambda i: (0, 0))
    w_spec = pl.BlockSpec((D, D), lambda i: (0, 0))        # resident bf16 weight

    out_shape = (
        jax.ShapeDtypeStruct((N, D), hidden_states.dtype),  # mixer out: model dtype
        jax.ShapeDtypeStruct((N, D), jnp.float32),           # residual_in_fp32=True
    )
    cparams = pltpu.CompilerParams(
        dimension_semantics=("parallel",),
        vmem_limit_bytes=_vmem_limit_bytes(),
    )

    if residual is None:
        out_h, out_r = pl.pallas_call(
            _block_kernel_nores,
            out_shape=out_shape,
            grid_spec=pltpu.PrefetchScalarGridSpec(
                num_scalar_prefetch=0,
                grid=(N // tr,),
                in_specs=[row_spec, param_spec, param_spec, w_spec, param_spec],
                out_specs=[row_spec, row_spec],
            ),
            compiler_params=cparams,
        )(h2, g2, b2, mixer_wt_bf16, mixer_b_row)
    else:
        r2 = residual.reshape(N, D)
        out_h, out_r = pl.pallas_call(
            _block_kernel,
            out_shape=out_shape,
            grid_spec=pltpu.PrefetchScalarGridSpec(
                num_scalar_prefetch=0,
                grid=(N // tr,),
                in_specs=[row_spec, row_spec, param_spec, param_spec, w_spec, param_spec],
                out_specs=[row_spec, row_spec],
            ),
            compiler_params=cparams,
        )(h2, r2, g2, b2, mixer_wt_bf16, mixer_b_row)

    return out_h.reshape(B, L, D), out_r.reshape(B, L, D)


# ----------------------------------------------------------------------------
# Plain-JAX reference (mirrors the PyTorch forward, fused_add_norm=False)
# ----------------------------------------------------------------------------
def block_reference(hidden_states, residual, gamma, beta, mixer_w, mixer_b):
    res = hidden_states + residual if residual is not None else hidden_states
    res32 = res.astype(jnp.float32)
    mean = jnp.mean(res32, axis=-1, keepdims=True)
    var = jnp.mean((res32 - mean) ** 2, axis=-1, keepdims=True)
    y = (res32 - mean) * jax.lax.rsqrt(var + EPS) * gamma + beta
    mixed = y @ mixer_w.T + mixer_b
    return mixed.astype(hidden_states.dtype), res32  # residual_in_fp32


# ----------------------------------------------------------------------------
# Self-test
# ----------------------------------------------------------------------------
def _run_check(B, L, D, key, with_residual=True):
    k1, k2, k3, k4, k5, k6 = jax.random.split(key, 6)
    hidden = jax.random.normal(k1, (B, L, D), dtype=jnp.float32)
    resid = jax.random.normal(k2, (B, L, D), dtype=jnp.float32) if with_residual else None

    gamma = 1.0 + 0.1 * jax.random.normal(k5, (D,), dtype=jnp.float32)
    beta = 0.01 * jax.random.normal(k6, (D,), dtype=jnp.float32)

    mixer_w = jax.random.normal(k3, (D, D), dtype=jnp.float32) * (1.0 / jnp.sqrt(D))
    mixer_b = jax.random.normal(k4, (D,), dtype=jnp.float32) * 0.01

    wt, wb = prepare_mixer_params(mixer_w, mixer_b)
    out_h, out_r = block_forward(hidden, resid, gamma, beta, wt, wb)
    jax.block_until_ready((out_h, out_r))

    ref_h, ref_r = block_reference(hidden, resid, gamma, beta, mixer_w, mixer_b)
    # bf16 MXU path -> loosened tolerance on the mixer output; residual is exact f32.
    assert jnp.allclose(out_h, ref_h, atol=1e-1, rtol=1e-2), "hidden mismatch"
    assert jnp.allclose(out_r, ref_r, atol=1e-5, rtol=1e-5), "residual mismatch"


if __name__ == "__main__":
    key = jax.random.PRNGKey(0)
    k0, k1, k2 = jax.random.split(key, 3)

    # Small shapes consistent with the module: (B, L, D)
    _run_check(2, 8, 128, k0, with_residual=True)
    _run_check(2, 8, 128, k1, with_residual=False)   # first-block path (no residual read)

    # Slightly larger shape to exercise the multi-step grid with big row tiles
    _run_check(2, 256, 256, k2, with_residual=True)

    print("KERNEL_OK")
</pallas_src>

<mosaic_0001>
module attributes {stable_mosaic.version = 11 : i64} {
  func.func @_block_kernel(%arg0: i32, %arg1: memref<16x128xf32, #tpu.memory_space<vmem>>, %arg2: memref<16x128xf32, #tpu.memory_space<vmem>>, %arg3: memref<1x128xf32, #tpu.memory_space<vmem>>, %arg4: memref<1x128xf32, #tpu.memory_space<vmem>>, %arg5: memref<128x128xbf16, #tpu.memory_space<vmem>>, %arg6: memref<1x128xf32, #tpu.memory_space<vmem>>, %arg7: memref<16x128xf32, #tpu.memory_space<vmem>>, %arg8: memref<16x128xf32, #tpu.memory_space<vmem>>) attributes {dimension_semantics = [#tpu.dimension_semantics<parallel>], iteration_bounds = array<i64: 1>, scalar_prefetch = 0 : i64, scratch_operands = 0 : i64, tpu.core_type = #tpu.core_type<tc>, window_params = [{transform_indices = @transform_0, window_bounds = array<i64: 16, 128>}, {transform_indices = @transform_1, window_bounds = array<i64: 16, 128>}, {pipeline_mode = #tpu.pipeline_mode<synchronous>, transform_indices = @transform_2, window_bounds = array<i64: 1, 128>}, {pipeline_mode = #tpu.pipeline_mode<synchronous>, transform_indices = @transform_3, window_bounds = array<i64: 1, 128>}, {pipeline_mode = #tpu.pipeline_mode<synchronous>, transform_indices = @transform_4, window_bounds = array<i64: 128, 128>}, {pipeline_mode = #tpu.pipeline_mode<synchronous>, transform_indices = @transform_5, window_bounds = array<i64: 1, 128>}, {transform_indices = @transform_6, window_bounds = array<i64: 16, 128>}, {transform_indices = @transform_7, window_bounds = array<i64: 16, 128>}]} {
    %c0 = arith.constant 0 : index
    %c0_0 = arith.constant 0 : index
    %0 = vector.load %arg1[%c0, %c0_0] : memref<16x128xf32, #tpu.memory_space<vmem>>, vector<16x128xf32>
    %c0_1 = arith.constant 0 : index
    %c0_2 = arith.constant 0 : index
    %1 = vector.load %arg2[%c0_1, %c0_2] : memref<16x128xf32, #tpu.memory_space<vmem>>, vector<16x128xf32>
    %2 = arith.addf %0, %1 : vector<16x128xf32>
    %c0_3 = arith.constant 0 : index
    %c0_4 = arith.constant 0 : index
    %3 = vector.load %arg8[%c0_3, %c0_4] : memref<16x128xf32, #tpu.memory_space<vmem>>, vector<16x128xf32>
    tpu.vector_store %arg8[%c0_3, %c0_4], %2 {strides = array<i32>} : memref<16x128xf32, #tpu.memory_space<vmem>>, vector<16x128xf32>,
    %cst = arith.constant dense<0.000000e+00> : vector<16xf32>
    %4 = vector.multi_reduction <add>, %2, %cst [1] : vector<16x128xf32> to vector<16xf32>
    %5 = vector.shape_cast %4 : vector<16xf32> to vector<16x1xf32>
    %cst_5 = arith.constant 1.280000e+02 : f32
    %6 = vector.broadcast %cst_5 : f32 to vector<16x1xf32>
    %7 = arith.divf %5, %6 : vector<16x1xf32>
    %8 = vector.broadcast %7 : vector<16x1xf32> to vector<16x128xf32>
    %9 = arith.subf %2, %8 : vector<16x128xf32>
    %10 = arith.mulf %9, %9 : vector<16x128xf32>
    %cst_6 = arith.constant dense<0.000000e+00> : vector<16xf32>
    %11 = vector.multi_reduction <add>, %10, %cst_6 [1] : vector<16x128xf32> to vector<16xf32>
    %12 = vector.shape_cast %11 : vector<16xf32> to vector<16x1xf32>
    %cst_7 = arith.constant 1.280000e+02 : f32
    %13 = vector.broadcast %cst_7 : f32 to vector<16x1xf32>
    %14 = arith.divf %12, %13 : vector<16x1xf32>
    %cst_8 = arith.constant 9.99999974E-6 : f32
    %15 = vector.broadcast %cst_8 : f32 to vector<16x1xf32>
    %16 = arith.addf %14, %15 : vector<16x1xf32>
    %17 = math.rsqrt %16 : vector<16x1xf32>
    %18 = vector.broadcast %17 : vector<16x1xf32> to vector<16x128xf32>
    %19 = arith.mulf %9, %18 : vector<16x128xf32>
    %c0_9 = arith.constant 0 : index
    %c0_10 = arith.constant 0 : index
    %20 = vector.load %arg3[%c0_9, %c0_10] : memref<1x128xf32, #tpu.memory_space<vmem>>, vector<1x128xf32>
    %21 = vector.broadcast %20 : vector<1x128xf32> to vector<16x128xf32>
    %22 = arith.mulf %19, %21 : vector<16x128xf32>
    %c0_11 = arith.constant 0 : index
    %c0_12 = arith.constant 0 : index
    %23 = vector.load %arg4[%c0_11, %c0_12] : memref<1x128xf32, #tpu.memory_space<vmem>>, vector<1x128xf32>
    %24 = vector.broadcast %23 : vector<1x128xf32> to vector<16x128xf32>
    %25 = arith.addf %22, %24 : vector<16x128xf32>
    %26 = arith.truncf %25 : vector<16x128xf32> to vector<16x128xbf16>
    %c0_13 = arith.constant 0 : index
    %c0_14 = arith.constant 0 : index
    %27 = vector.load %arg5[%c0_13, %c0_14] : memref<128x128xbf16, #tpu.memory_space<vmem>>, vector<128x128xbf16>
    %cst_15 = arith.constant dense<0.000000e+00> : vector<16x128xf32>
    %28 = tpu.matmul %26, %27, %cst_15 {dimension_numbers = #tpu.dot_dimension_numbers<[1], [0], [0], [1], [0, 0, 1, 1], [], []>} : vector<16x128xbf16>, vector<128x128xbf16>, vector<16x128xf32> -> vector<16x128xf32>
    %c0_16 = arith.constant 0 : index
    %c0_17 = arith.constant 0 : index
    %29 = vector.load %arg6[%c0_16, %c0_17] : memref<1x128xf32, #tpu.memory_space<vmem>>, vector<1x128xf32>
    %30 = vector.broadcast %29 : vector<1x128xf32> to vector<16x128xf32>
    %31 = arith.addf %28, %30 : vector<16x128xf32>
    %c0_18 = arith.constant 0 : index
    %c0_19 = arith.constant 0 : index
    %32 = vector.load %arg7[%c0_18, %c0_19] : memref<16x128xf32, #tpu.memory_space<vmem>>, vector<16x128xf32>
    tpu.vector_store %arg7[%c0_18, %c0_19], %31 {strides = array<i32>} : memref<16x128xf32, #tpu.memory_space<vmem>>, vector<16x128xf32>,
    return
  }
  func.func @transform_0(%arg0: i32) -> (i32, i32) {
    %c0_i32 = arith.constant 0 : i32
    %c0_i32_0 = arith.constant 0 : i32
    return %arg0, %c0_i32 : i32, i32
  }
  func.func @transform_1(%arg0: i32) -> (i32, i32) {
    %c0_i32 = arith.constant 0 : i32
    %c0_i32_0 = arith.constant 0 : i32
    return %arg0, %c0_i32 : i32, i32
  }
  func.func @transform_2(%arg0: i32) -> (i32, i32) {
    %c0_i32 = arith.constant 0 : i32
    %c0_i32_0 = arith.constant 0 : i32
    %c0_i32_1 = arith.constant 0 : i32
    return %c0_i32, %c0_i32_0 : i32, i32
  }
  func.func @transform_3(%arg0: i32) -> (i32, i32) {
    %c0_i32 = arith.constant 0 : i32
    %c0_i32_0 = arith.constant 0 : i32
    %c0_i32_1 = arith.constant 0 : i32
    return %c0_i32, %c0_i32_0 : i32, i32
  }
  func.func @transform_4(%arg0: i32) -> (i32, i32) {
    %c0_i32 = arith.constant 0 : i32
    %c0_i32_0 = arith.constant 0 : i32
    %c0_i32_1 = arith.constant 0 : i32
    return %c0_i32, %c0_i32_0 : i32, i32
  }
  func.func @transform_5(%arg0: i32) -> (i32, i32) {
    %c0_i32 = arith.constant 0 : i32
    %c0_i32_0 = arith.constant 0 : i32
    %c0_i32_1 = arith.constant 0 : i32
    return %c0_i32, %c0_i32_0 : i32, i32
  }
  func.func @transform_6(%arg0: i32) -> (i32, i32) {
    %c0_i32 = arith.constant 0 : i32
    %c0_i32_0 = arith.constant 0 : i32
    return %arg0, %c0_i32 : i32, i32
  }
  func.func @transform_7(%arg0: i32) -> (i32, i32) {
    %c0_i32 = arith.constant 0 : i32
    %c0_i32_0 = arith.constant 0 : i32
    return %arg0, %c0_i32 : i32, i32
  }
}

</mosaic_0001>

<bundles_post_ra>
// kernel: tpu_custom_call.1
= control target key start
LH: loop header
LB: loop body
LE: loop exit
PB: predicated region body
PF: predicated region fallthrough
CT: control target
= control target key end

     0   :  { %13 = vsyncpa [#allocation3], 0  ;;  %s728_s0 = inlined_call_operand.hbm [shape: f32[16,128], index: 0, kind: input, shape index: {}]   ;;  %s729_s1 = inlined_call_operand.hbm [shape: f32[16,128], index: 1, kind: input, shape index: {}]   ;;  %s730_s2 = inlined_call_operand.hbm [shape: f32[1,128], index: 2, kind: input, shape index: {}]   ;;  %s731_s3 = inlined_call_operand.hbm [shape: f32[1,128], index: 3, kind: input, shape index: {}]   ;;  %s732_s4 = inlined_call_operand.hbm [shape: bf16[128,128], index: 4, kind: input, shape index: {}]   ;;  %s733_s5 = inlined_call_operand.hbm [shape: f32[1,128], index: 5, kind: input, shape index: {}]   ;;  %s734_s6 = inlined_call_operand.hbm [shape: f32[16,128], index: 6, kind: output, shape index: {0}]   ;;  %s735_s7 = inlined_call_operand.hbm [shape: f32[16,128], index: 7, kind: output, shape index: {1}]  }
   0x1   :  { %14 = vsyncpa [#allocation6], 0 }
   0x2   :  { %15 = vsyncpa [#allocation9], 0 }
   0x3   :  { %16 = vsyncpa [#allocation12], 0 }
   0x4   :  { %17 = vsyncpa [#allocation4], 0 }
   0x5   :  { %18 = vsyncpa [#allocation15], 0  ;;  %s558_s24 = smov [#allocation5]   ;;  %s559_s26 = smov [#allocation8]  }
   0x6   :  { %s36_s25 = sshll.u32 %s558_s24, 4  ;;  %s59_s27 = sshll.u32 %s559_s26, 4  ;;  %s37_s25 = int_to_ptr.vmem [resolvable:$true] %s36_s25  ;;  %s612_s27 = int_to_ptr.vmem [resolvable:$true] %s59_s27 }
   0x7   :  { %s370_s30 = scalar_lea.hbm %s729_s1, 256 }
   0x8   :  { %p371_p0 = scmp.ne.s32.totalorder %s729_s1, %s370_s30  ;;  %p374_p1 = scmp.lt.u32.totalorder %s370_s30, %s729_s1 }
   0xa   :  { %p376_p2 = pnand %p374_p1, %p371_p0 }
   0xc   :  { %379 = shalt.err (!%p376_p2)
}
   0xd   :  { %s380_s12 = scalar_lea.vmem %s37_s25, 256  ;;  %p385_p4 = scmp.lt.s32.totalorder %s37_s25, %s37_s25 }
   0xe   :  { %p381_p3 = scmp.ne.s32.totalorder %s37_s25, %s380_s12  ;;  %p386_p5 = scmp.lt.s32.totalorder %s380_s12, %s380_s12 }
  0x10   :  { %p387_p6 = por %p386_p5, %p385_p4 }
  0x12   :  { %p388_p7 = pnand %p387_p6, %p381_p3 }
  0x14   :  { %391 = shalt.err (!%p388_p7)
}
  0x15   :  { %s560_s13 = smov 128   ;;  %s561_s14 = smov 8  }
  0x16   :  { %42 = dma.hbm_to_vmem [thread:$0]  %s729_s1, 256, %s37_s25, [#allocation6], %s560_s13, %s560_s13, %s561_s14  }
  0x17   :  { %s392_s19 = scalar_lea.hbm %s731_s3, 16 }
  0x18   :  { %p393_p8 = scmp.ne.s32.totalorder %s731_s3, %s392_s19  ;;  %p396_p9 = scmp.lt.u32.totalorder %s392_s19, %s731_s3 }
  0x1a   :  { %p398_p10 = pnand %p396_p9, %p393_p8 }
  0x1c   :  { %401 = shalt.err (!%p398_p10)
}
  0x1d   :  { %s402_s24 = scalar_lea.vmem %s612_s27, 16  ;;  %s406_s1 = scalar_lea.vmem %s612_s27, 32 }
  0x1e   :  { %p403_p11 = scmp.ne.s32.totalorder %s612_s27, %s402_s24  ;;  %p407_p12 = scmp.lt.s32.totalorder %s612_s27, %s612_s27 }
  0x1f   :  { %p408_p13 = scmp.lt.s32.totalorder %s406_s1, %s402_s24 }
  0x21   :  { %p409_p0 = por %p408_p13, %p407_p12 }
  0x23   :  { %p410_p1 = pnand %p409_p0, %p403_p11 }
  0x25   :  { %413 = shalt.err (!%p410_p1)
}
  0x26   :  { %62 = dma.hbm_to_vmem [thread:$0]  %s731_s3, 16, %s612_s27, [#allocation9]  }
  0x27   :  { %s562_s28 = smov [#allocation2]   ;;  %s563_s30 = smov [#allocation7]  }
  0x28   :  { %s24_s29 = sshll.u32 %s562_s28, 4  ;;  %s49_s8 = sshll.u32 %s563_s30, 4  ;;  %s25_s29 = int_to_ptr.vmem [resolvable:$true] %s24_s29  ;;  %s50_s8 = int_to_ptr.vmem [resolvable:$true] %s49_s8 }
  0x29   :  { %s414_s11 = scalar_lea.hbm %s728_s0, 256 }
  0x2a   :  { %p415_p2 = scmp.ne.s32.totalorder %s728_s0, %s414_s11  ;;  %p418_p3 = scmp.lt.u32.totalorder %s414_s11, %s728_s0 }
  0x2c   :  { %p420_p4 = pnand %p418_p3, %p415_p2 }
  0x2e   :  { %423 = shalt.err (!%p420_p4)
}
  0x2f   :  { %s424_s3 = scalar_lea.vmem %s25_s29, 256  ;;  %p429_p6 = scmp.lt.s32.totalorder %s25_s29, %s25_s29 }
  0x30   :  { %p425_p5 = scmp.ne.s32.totalorder %s25_s29, %s424_s3  ;;  %p430_p7 = scmp.lt.s32.totalorder %s424_s3, %s424_s3 }
  0x32   :  { %p431_p8 = por %p430_p7, %p429_p6 }
  0x34   :  { %p432_p9 = pnand %p431_p8, %p425_p5 }
  0x36   :  { %435 = shalt.err (!%p432_p9)
}
  0x37   :  { %30 = dma.hbm_to_vmem [thread:$0]  %s728_s0, 256, %s25_s29, [#allocation3], %s560_s13, %s560_s13, %s561_s14  }
  0x38   :  { %s436_s21 = scalar_lea.hbm %s730_s2, 16 }
  0x39   :  { %p437_p10 = scmp.ne.s32.totalorder %s730_s2, %s436_s21  ;;  %p440_p11 = scmp.lt.u32.totalorder %s436_s21, %s730_s2 }
  0x3b   :  { %p442_p12 = pnand %p440_p11, %p437_p10 }
  0x3d   :  { %445 = shalt.err (!%p442_p12)
}
  0x3e   :  { %s446_s25 = scalar_lea.vmem %s50_s8, 16  ;;  %s450_s26 = scalar_lea.vmem %s50_s8, 32 }
  0x3f   :  { %p447_p13 = scmp.ne.s32.totalorder %s50_s8, %s446_s25  ;;  %p451_p0 = scmp.lt.s32.totalorder %s50_s8, %s50_s8 }
  0x40   :  { %p452_p1 = scmp.lt.s32.totalorder %s450_s26, %s446_s25 }
  0x42   :  { %p453_p2 = por %p452_p1, %p451_p0 }
  0x44   :  { %p454_p3 = pnand %p453_p2, %p447_p13 }
  0x46   :  { %457 = shalt.err (!%p454_p3)
}
  0x47   :  { %52 = dma.hbm_to_vmem [thread:$0]  %s730_s2, 16, %s50_s8, [#allocation6]  }
  0x48   :  { %s564_s29 = smov [#allocation10]   ;;  %s458_s11 = scalar_lea.hbm %s732_s4, 1024 }
  0x49   :  { %s68_s30 = sshll.u32 %s564_s29, 4  ;;  %p459_p4 = scmp.ne.s32.totalorder %s732_s4, %s458_s11  ;;  %s69_s30 = int_to_ptr.vmem [resolvable:$true] %s68_s30 }
  0x4a   :  { %p462_p5 = scmp.lt.u32.totalorder %s458_s11, %s732_s4 }
  0x4c   :  { %p464_p6 = pnand %p462_p5, %p459_p4 }
  0x4e   :  { %467 = shalt.err (!%p464_p6)
}
  0x4f   :  { %s468_s3 = scalar_lea.vmem %s69_s30, 1024  ;;  %p473_p8 = scmp.lt.s32.totalorder %s69_s30, %s69_s30 }
  0x50   :  { %p469_p7 = scmp.ne.s32.totalorder %s69_s30, %s468_s3  ;;  %p474_p9 = scmp.lt.s32.totalorder %s468_s3, %s468_s3 }
  0x52   :  { %p475_p10 = por %p474_p9, %p473_p8 }
  0x54   :  { %p476_p11 = pnand %p475_p10, %p469_p7 }
  0x56   :  { %479 = shalt.err (!%p476_p11)
}
  0x57   :  { %s565_s2 = smov 64   ;;  %s566_s8 = smov 4  }
  0x58   :  { %74 = dma.hbm_to_vmem [thread:$0]  %s732_s4, 1024, %s69_s30, [#allocation9], %s565_s2, %s565_s2, %s566_s8  }
  0x59   :  { %s567_s19 = smov [#allocation11]   ;;  %s480_s23 = scalar_lea.hbm %s733_s5, 16 }
  0x5a   :  { %s81_s20 = sshll.u32 %s567_s19, 4  ;;  %p481_p12 = scmp.ne.s32.totalorder %s733_s5, %s480_s23  ;;  %s82_s20 = int_to_ptr.vmem [resolvable:$true] %s81_s20 }
  0x5b   :  { %p484_p13 = scmp.lt.u32.totalorder %s480_s23, %s733_s5 }
  0x5d   :  { %p486_p0 = pnand %p484_p13, %p481_p12 }
  0x5f   :  { %489 = shalt.err (!%p486_p0)
}
  0x60   :  { %s490_s0 = scalar_lea.vmem %s82_s20, 16  ;;  %s494_s4 = scalar_lea.vmem %s82_s20, 32 }
  0x61   :  { %p491_p1 = scmp.ne.s32.totalorder %s82_s20, %s490_s0  ;;  %p495_p2 = scmp.lt.s32.totalorder %s82_s20, %s82_s20 }
  0x62   :  { %p496_p3 = scmp.lt.s32.totalorder %s494_s4, %s490_s0 }
  0x64   :  { %p497_p4 = por %p496_p3, %p495_p2 }
  0x66   :  { %p498_p5 = pnand %p497_p4, %p491_p1 }
  0x68   :  { %501 = shalt.err (!%p498_p5)
}
  0x69   :  { %84 = dma.hbm_to_vmem [thread:$0]  %s733_s5, 16, %s82_s20, [#allocation12]  }
  0x6a   :  { %546 = dma.done.wait [#allocation3], 256  }
  0x6b   :  { %547 = vsyncadd [#allocation3], 4294967040 }
  0x6c   :  { %548 = dma.done.wait [#allocation6], 272  }
  0x6d   :  { %549 = vsyncadd [#allocation6], 4294967024 }
  0x6e   :  { %550 = dma.done.wait [#allocation9], 1040  }
  0x6f   :  { %551 = vsyncadd [#allocation9], 4294966256 }
  0x70   :  { %552 = dma.done.wait [#allocation12], 16  }
  0x71   :  { %553 = vsyncadd [#allocation12], 4294967280  ;;  %v104_v0 = vld [vmem:[#allocation2] sm:$0xff]  ;;  %v106_v1 = vld [vmem:[#allocation5] sm:$0xff]  ;;  %v568_v7 = vmov 0.0   ;;  %vm569_vm0 = vmmov 0  }
  0x72   :  { %v105_v2 = vld [vmem:[#allocation2 + $0x8] sm:$0xff]  ;;  %v108_v3 = vadd.f32 %v106_v1, %v104_v0  ;;  %v107_v4 = vld [vmem:[#allocation5 + $0x8] sm:$0xff]  ;;  %324 = vmatprep.subr.bf16.mxu0 %v568_v7  ;;  %340 = vmatprep.mubr.msk.bf16.mxu0 %vm569_vm0, %v568_v7  ;;  %v304_v31 = vld [vmem:[#allocation7] ss:$0 sm:$0xff]  ;;  %s570_s5 = smov [#allocation14]  }
  0x73   :  { %v109_v5 = vadd.f32 %v107_v4, %v105_v2  ;;  %v358_v6 = vld [vmem:[#allocation10] sm:$0xff]   ;;  %v359_v16 = vld [vmem:[#allocation10 + $0x8] sm:$0xff]   ;;  %v360_v17 = vld [vmem:[#allocation10 + $0x10] sm:$0xff]   ;;  %s285_s30 = sshll.u32 %s570_s5, 4  ;;  %s286_s30 = int_to_ptr.vmem [resolvable:$true] %s285_s30 }
  0x74   :  { %112 = vadd.xlane.f32.xlu0 %v108_v3  ;;  %110 = vst [vmem:[#allocation14] sm:$0xff] %v108_v3  ;;  %325 = vmatpush3.bf16.msra.mxu0 %v358_v6  ;;  %v361_v18 = vld [vmem:[#allocation10 + $0x18] sm:$0xff]   ;;  %v362_v19 = vld [vmem:[#allocation10 + $0x20] sm:$0xff]   ;;  %v363_v20 = vld [vmem:[#allocation10 + $0x28] sm:$0xff]   ;;  %s502_s9 = scalar_lea.vmem %s286_s30, 256  ;;  %p507_p7 = scmp.lt.s32.totalorder %s286_s30, %s286_s30 }
  0x75   :  { %111 = vst [vmem:[#allocation14 + $0x8] sm:$0xff] %v109_v5  ;;  %326 = vmatprep.subr.bf16.mxu0 %v568_v7  ;;  %v364_v21 = vld [vmem:[#allocation10 + $0x30] sm:$0xff]   ;;  %v365_v22 = vld [vmem:[#allocation10 + $0x38] sm:$0xff]   ;;  %p503_p6 = scmp.ne.s32.totalorder %s286_s30, %s502_s9  ;;  %p508_p8 = scmp.lt.s32.totalorder %s502_s9, %s502_s9 }
  0x76   :  { %v305_v35 = vld [vmem:[#allocation8] ss:$0 sm:$0xff] }
  0x77   :  { %p509_p9 = por %p508_p8, %p507_p7 }
  0x78   :  { %114 = vadd.xlane.f32.xlu0 %v109_v5  ;;  %327 = vmatpush3.bf16.msra.mxu0 %v359_v16 }
  0x79   :  { %328 = vmatprep.subr.bf16.mxu0 %v568_v7  ;;  %p510_p10 = pnand %p509_p9, %p503_p6 }
  0x7c   :  { %329 = vmatpush3.bf16.msra.mxu0 %v360_v17 }
  0x7d   :  { %330 = vmatprep.subr.bf16.mxu0 %v568_v7 }
  0x80   :  { %331 = vmatpush3.bf16.msra.mxu0 %v361_v18 }
  0x81   :  { %332 = vmatprep.subr.bf16.mxu0 %v568_v7 }
  0x84   :  { %333 = vmatpush3.bf16.msra.mxu0 %v362_v19 }
  0x85   :  { %334 = vmatprep.subr.bf16.mxu0 %v568_v7 }
  0x88   :  { %335 = vmatpush3.bf16.msra.mxu0 %v363_v20 }
  0x89   :  { %336 = vmatprep.subr.bf16.mxu0 %v568_v7 }
  0x8c   :  { %337 = vmatpush3.bf16.msra.mxu0 %v364_v21 }
  0x8d   :  { %338 = vmatprep.subr.bf16.mxu0 %v568_v7 }
  0x90   :  { %339 = vmatpush3.bf16.msra.mxu0 %v365_v22 }
 0x101   :  { %v113_v8 = vpop.xlane.xlu0 %112 }
 0x102   :  { %v117_v9 = vmul.f32 0.0078125, %v113_v8 }
 0x104   :  { %v119_v10 = vsub.f32 %v108_v3, %v117_v9 }
 0x105   :  { %v115_v11 = vpop.xlane.xlu0 %114 }
 0x106   :  { %v118_v12 = vmul.f32 0.0078125, %v115_v11  ;;  %v121_v13 = vmul.f32 %v119_v10, %v119_v10 }
 0x108   :  { %v120_v14 = vsub.f32 %v109_v5, %v118_v12  ;;  %123 = vadd.xlane.f32.xlu1 %v121_v13 }
 0x10a   :  { %v122_v15 = vmul.f32 %v120_v14, %v120_v14 }
 0x10c   :  { %125 = vadd.xlane.f32.xlu1 %v122_v15 }
 0x195   :  { %v124_v23 = vpop.xlane.xlu1 %123 }
 0x196   :  { %v127_v24 = vmul.f32 0.0078125, %v124_v23 }
 0x198   :  { %v129_v25 = vadd.f32 1e-05, %v127_v24 }
 0x199   :  { %v126_v26 = vpop.xlane.xlu1 %125 }
 0x19a   :  { %366 = vrsqrt.f32 %v129_v25  ;;  %v128_v27 = vmul.f32 0.0078125, %v126_v26 }
 0x19c   :  { %v130_v28 = vadd.f32 1e-05, %v128_v27 }
 0x19e   :  { %368 = vrsqrt.f32 %v130_v28 }
 0x1a4   :  { %v367_v29 = vpop.eup %366 }
 0x1a5   :  { %v133_v30 = vmul.f32 %v367_v29, %v119_v10 }
 0x1a7   :  { %v142_v34 = vmul.f32 %v304_v31, %v133_v30 }
 0x1a8   :  { %v369_v32 = vpop.eup %368 }
 0x1a9   :  { %v134_v33 = vmul.f32 %v369_v32, %v120_v14  ;;  %v151_v37 = vadd.f32 %v305_v35, %v142_v34 }
 0x1ab   :  { %v143_v36 = vmul.f32 %v304_v31, %v134_v33 }
 0x1ad   :  { %v152_v38 = vadd.f32 %v305_v35, %v143_v36 }
 0x1af   :  { %v153_v39 = vpack.c.bf16 %v152_v38, %v151_v37 }
 0x1b1   :  { %341 = vmatmul.mubr.bf16.vlgmr.msra.gmra.mrb[0].mxu0 %v153_v39 }
 0x1b2   :  { %513 = shalt.err (!%p510_p10)
}
 0x1b3   :  { %s514_s12 = scalar_lea.hbm %s735_s7, 256 }
 0x1b4   :  { %p515_p11 = scmp.ne.s32.totalorder %s735_s7, %s514_s12  ;;  %p518_p12 = scmp.lt.u32.totalorder %s514_s12, %s735_s7 }
 0x1b6   :  { %p520_p13 = pnand %p518_p12, %p515_p11 }
 0x1b8   :  { %523 = shalt.err (!%p520_p13)
}
 0x1b9   :  { %291 = dma.vmem_to_hbm [thread:$0]  %s286_s30, 256, %s735_s7, [#allocation15], %s560_s13, %s560_s13, %s561_s14   ;;  %v306_v40 = vld [vmem:[#allocation11] ss:$0 sm:$0xff] }
 0x1ba   :  { %s571_s27 = smov [#allocation13]  }
 0x1bb   :  { %s273_s18 = sshll.u32 %s571_s27, 4  ;;  %s274_s18 = int_to_ptr.vmem [resolvable:$true] %s273_s18 }
 0x1bc   :  { %s524_s19 = scalar_lea.vmem %s274_s18, 256  ;;  %p529_p1 = scmp.lt.s32.totalorder %s274_s18, %s274_s18 }
 0x1bd   :  { %p525_p0 = scmp.ne.s32.totalorder %s274_s18, %s524_s19  ;;  %p530_p2 = scmp.lt.s32.totalorder %s524_s19, %s524_s19 }
 0x1bf   :  { %p531_p3 = por %p530_p2, %p529_p1 }
 0x1c1   :  { %p532_p4 = pnand %p531_p3, %p525_p0 }
 0x284   :  { %v259_v41 = vpop.f32.mrb[0].mxu0 }
 0x285   :  { %v260_v42 = vadd.f32 %v306_v40, %v259_v41  ;;  %v342_v43 = vpop.f32.mrb[1].mxu0 }
 0x286   :  { %v262_v44 = vpop.f32.mrb[2].mxu0 }
 0x287   :  { %266 = vst [vmem:[#allocation13] sm:$0xff] %v260_v42  ;;  %v263_v45 = vadd.f32 %v306_v40, %v262_v44  ;;  %v343_v46 = vpop.f32.mrb[3].mxu0 }
 0x289   :  { %267 = vst [vmem:[#allocation13 + $0x8] sm:$0xff] %v263_v45 }
 0x28a   :  { %535 = shalt.err (!%p532_p4)
}
 0x28b   :  { %s536_s21 = scalar_lea.hbm %s734_s6, 256 }
 0x28c   :  { %p537_p5 = scmp.ne.s32.totalorder %s734_s6, %s536_s21  ;;  %p540_p6 = scmp.lt.u32.totalorder %s536_s21, %s734_s6 }
 0x28e   :  { %p542_p7 = pnand %p540_p6, %p537_p5 }
 0x290   :  { %545 = shalt.err (!%p542_p7)
}
 0x291   :  { %279 = dma.vmem_to_hbm [thread:$0]  %s274_s18, 256, %s734_s6, [#allocation4], %s560_s13, %s560_s13, %s561_s14  }
 0x292   :  { %554 = dma.done.wait [#allocation4], 256  }
 0x293   :  { %555 = vsyncadd [#allocation4], 4294967040 }
 0x294   :  { %556 = dma.done.wait [#allocation15], 256  }
 0x295   :  { %557 = vsyncadd [#allocation15], 4294967040 }
 0x296   :  { %298 = vsyncpa [#allocation3], 1 }
 0x297   :  { %299 = vsyncpa [#allocation6], 1 }
 0x298   :  { %300 = vsyncpa [#allocation9], 1 }
 0x299   :  { %301 = vsyncpa [#allocation12], 1 }
 0x29a   :  { %302 = vsyncpa [#allocation4], 1 }
 0x29b   :  { %303 = vsyncpa [#allocation15], 1 }

</bundles_post_ra>
